<compile_context>
chip_gen: v5e
topology: v5e:2x2
jax: 0.10.0
libtpu: 0.0.40
codegen_flags: <defaults>
</compile_context>

<pallas_src>
import jax
import jax.numpy as jnp
from jax.experimental import pallas as pl
from jax.experimental.pallas import tpu as pltpu


# --------------------------------------------------------------------------- #
# Kernel
# --------------------------------------------------------------------------- #
def _attention_kernel(enc_ref, wt_ref, b_ref, v_ref, out_ref):
    # enc_ref: (R, 2H) with R = block_b * S (batch*seq rows, pre-flattened)
    # wt_ref:  (2H, H)    b_ref: (1, H)    v_ref: (1, H)
    # out_ref: (block_b, S)
    bt, s = out_ref.shape
    h = wt_ref.shape[1]

    # Linear(2H -> H) on the MXU (f32 accumulation), bias + tanh on VPU/EUP.
    energy = jnp.tanh(
        jnp.dot(enc_ref[...], wt_ref[...], preferred_element_type=jnp.float32)
        + b_ref[...]
    )                                                  # (R, H) f32

    # Trailing-dim-preserving reshape (layout no-op when S % 8 == 0), then the
    # v-projection as a VPU multiply + lane reduce (no N=1 MXU matmul).
    energy = energy.reshape(bt, s, h)                  # (Bt, S, H)
    scores = jnp.sum(energy * v_ref[...], axis=-1)     # (Bt, S) f32

    # Softmax over the sequence axis (last / lane axis -> standard lane reduce).
    m = jnp.max(scores, axis=-1, keepdims=True)
    e = jnp.exp(scores - m)
    denom = jnp.sum(e, axis=-1, keepdims=True)
    # EUP approx reciprocal + one Newton refinement (full f32 accuracy, cheap).
    r = pl.reciprocal(denom, approx=True)
    r = r * (2.0 - denom * r)
    out_ref[...] = (e * r).astype(out_ref.dtype)       # (Bt, S)


# --------------------------------------------------------------------------- #
# Tiling / VMEM sizing helpers
# --------------------------------------------------------------------------- #
def _vmem_limits():
    """(physical VMEM bytes, vmem_limit_bytes to request) for this chip."""
    phys = 64 * 1024 * 1024                      # conservative default (v7x)
    try:
        info = pltpu.get_tpu_info()
        phys = int(getattr(info, "vmem_capacity_bytes", phys)) or phys
    except Exception:
        pass
    # Leave headroom for compiler-internal scratch; never request more than
    # 96 MiB even on 128 MiB parts (v5e/v6e), ~48 MiB on v7x (64 MiB parts).
    limit = min((phys * 3) // 4, 96 * 1024 * 1024)
    return phys, int(limit)


def _pick_block_b(B, S, two_h, in_bytes, vmem_budget):
    """Largest batch tile (divisor of B, multiple of 8 or == B for sublane
    alignment of the (Bt, S) output block) whose working set fits the VMEM
    budget.  Prefers >= 2 grid steps so the parallel axis can use both
    TensorCores on v7x."""
    h = two_h // 2

    def bytes_needed(bb):
        rows = bb * S
        return (
            2 * rows * two_h * in_bytes      # double-buffered encoder tile
            + 3 * rows * h * 4               # energy / exp / product f32 temps
            + 2 * two_h * h * in_bytes       # (double-buffered) weight tile
            + 2 * 2 * h * 4                  # bias + v
            + 2 * bb * S * 4                 # double-buffered output tile
        )

    cands = [d for d in range(1, B + 1)
             if B % d == 0 and (d % 8 == 0 or d == B)]
    feasible = [d for d in cands if bytes_needed(d) <= vmem_budget]
    if not feasible:
        return min(cands)                    # smallest legal tile; best effort
    multi = [d for d in feasible if B // d >= 2]
    return max(multi) if multi else max(feasible)


# --------------------------------------------------------------------------- #
# Wrapper
# --------------------------------------------------------------------------- #
def attention_forward(hidden, encoder_outputs, w, b, v, *,
                      block_b=None, compute_dtype=None):
    """Pallas forward pass.

    hidden:          (B, H)       -- unused (matches PyTorch forward signature)
    encoder_outputs: (B, S, 2H)   -- f32 or bf16; fed to the MXU as-is
    w:               (H, 2H)      -- nn.Linear weight (PyTorch layout)
    b:               (H,)         -- nn.Linear bias
    v:               (H,)         -- attention vector parameter
    compute_dtype:   optional dtype to cast encoder_outputs to (e.g. bf16 to
                     halve HBM traffic on the only HBM-heavy operand)
    returns:         (B, S) f32   -- softmax attention weights
    """
    del hidden  # not used in the PyTorch forward either
    B, S, two_h = encoder_outputs.shape
    H = two_h // 2
    assert w.shape == (H, two_h) and b.shape == (H,) and v.shape == (H,)

    cdt = jnp.dtype(compute_dtype) if compute_dtype is not None \
        else jnp.dtype(encoder_outputs.dtype)
    # Flatten batch*seq in the wrapper: contiguous HBM reshape is free and the
    # kernel never has to reshape its big VMEM tile.
    enc_flat = encoder_outputs.astype(cdt).reshape(B * S, two_h)   # (B*S, 2H)
    wt = w.T.astype(cdt)                            # (2H, H) pre-transposed
    b2 = b.reshape(1, H).astype(jnp.float32)        # (1, H)
    v2 = v.reshape(1, H).astype(jnp.float32)        # (1, H)

    phys_vmem, vmem_limit = _vmem_limits()
    del phys_vmem
    if block_b is None:
        block_b = _pick_block_b(B, S, two_h, cdt.itemsize,
                                int(vmem_limit * 0.65))
    assert B % block_b == 0
    grid = (B // block_b,)

    out = pl.pallas_call(
        _attention_kernel,
        out_shape=jax.ShapeDtypeStruct((B, S), jnp.float32),
        grid_spec=pltpu.PrefetchScalarGridSpec(
            num_scalar_prefetch=0,
            grid=grid,
            in_specs=[
                pl.BlockSpec((block_b * S, two_h), lambda i: (i, 0)),
                pl.BlockSpec((two_h, H), lambda i: (0, 0)),
                pl.BlockSpec((1, H), lambda i: (0, 0)),
                pl.BlockSpec((1, H), lambda i: (0, 0)),
            ],
            out_specs=pl.BlockSpec((block_b, S), lambda i: (i, 0)),
        ),
        compiler_params=pltpu.CompilerParams(
            dimension_semantics=("parallel",),
            vmem_limit_bytes=vmem_limit,
        ),
    )(enc_flat, wt, b2, v2)

    return out                                       # (B, S)


def attention_reference(encoder_outputs, w, b, v):
    """Pure-JAX reference matching the PyTorch module (f32)."""
    enc = encoder_outputs.astype(jnp.float32)
    energy = jnp.tanh(jnp.einsum("bsf,hf->bsh", enc, w) + b)      # (B, S, H)
    scores = jnp.einsum("h,bsh->bs", v, energy)                   # (B, S)
    return jax.nn.softmax(scores, axis=1)


# --------------------------------------------------------------------------- #
# Self-test
# --------------------------------------------------------------------------- #
if __name__ == "__main__":
    key = jax.random.PRNGKey(0)

    # ---- Small shape matching the module defaults (B=2, S=8, H=32) --------
    B, S, H = 2, 8, 32
    k_enc, k_hid, k_w, k_b, k_v = jax.random.split(key, 5)

    encoder_outputs = jax.random.normal(k_enc, (B, S, 2 * H), dtype=jnp.float32)
    hidden = jax.random.normal(k_hid, (B, H), dtype=jnp.float32)

    # Deterministic parameter init mimicking nn.Linear / the module's __init__.
    bound = 1.0 / jnp.sqrt(2.0 * H)
    w = jax.random.uniform(k_w, (H, 2 * H), jnp.float32, -bound, bound)
    b = jax.random.uniform(k_b, (H,), jnp.float32, -bound, bound)
    v = jax.random.uniform(k_v, (H,), jnp.float32, -0.1, 0.1)

    ref = attention_reference(encoder_outputs, w, b, v)

    # f32 path: strict accuracy check.
    out_f32 = attention_forward(hidden, encoder_outputs, w, b, v)
    out_f32 = jax.block_until_ready(out_f32)
    assert out_f32.shape == (B, S)
    assert jnp.allclose(out_f32, ref, atol=1e-5, rtol=1e-5)
    assert jnp.allclose(jnp.sum(out_f32, axis=1), 1.0, atol=1e-5)

    # bf16 path: MXU fed bf16 (half the HBM traffic), f32 accumulation.
    out_bf16 = attention_forward(hidden, encoder_outputs, w, b, v,
                                 compute_dtype=jnp.bfloat16)
    out_bf16 = jax.block_until_ready(out_bf16)
    assert out_bf16.shape == (B, S)
    assert jnp.allclose(out_bf16, ref, atol=2e-2)
    assert jnp.allclose(jnp.sum(out_bf16, axis=1), 1.0, atol=1e-3)

    # ---- Larger shape: exercises VMEM-budget tiling + multi-step grid ------
    B2, S2, H2 = 16, 128, 64
    k_enc2, k_w2, k_b2, k_v2 = jax.random.split(jax.random.PRNGKey(1), 4)
    enc2 = jax.random.normal(k_enc2, (B2, S2, 2 * H2), dtype=jnp.float32)
    hid2 = jnp.zeros((B2, H2), jnp.float32)
    bound2 = 1.0 / jnp.sqrt(2.0 * H2)
    w2 = jax.random.uniform(k_w2, (H2, 2 * H2), jnp.float32, -bound2, bound2)
    b2 = jax.random.uniform(k_b2, (H2,), jnp.float32, -bound2, bound2)
    v2 = jax.random.uniform(k_v2, (H2,), jnp.float32, -0.1, 0.1)

    ref2 = attention_reference(enc2, w2, b2, v2)
    out2 = jax.block_until_ready(attention_forward(hid2, enc2, w2, b2, v2))
    assert out2.shape == (B2, S2)
    assert jnp.allclose(out2, ref2, atol=1e-4, rtol=1e-4)
    assert jnp.allclose(jnp.sum(out2, axis=1), 1.0, atol=1e-5)

    print("KERNEL_OK")
</pallas_src>

<mosaic_0001>
module attributes {stable_mosaic.version = 11 : i64} {
  func.func @_attention_kernel(%arg0: i32, %arg1: memref<16x64xf32, #tpu.memory_space<vmem>>, %arg2: memref<64x32xf32, #tpu.memory_space<vmem>>, %arg3: memref<1x32xf32, #tpu.memory_space<vmem>>, %arg4: memref<1x32xf32, #tpu.memory_space<vmem>>, %arg5: memref<2x8xf32, #tpu.memory_space<vmem>>) attributes {dimension_semantics = [#tpu.dimension_semantics<parallel>], iteration_bounds = array<i64: 1>, scalar_prefetch = 0 : i64, scratch_operands = 0 : i64, tpu.core_type = #tpu.core_type<tc>, window_params = [{transform_indices = @transform_0, window_bounds = array<i64: 16, 64>}, {pipeline_mode = #tpu.pipeline_mode<synchronous>, transform_indices = @transform_1, window_bounds = array<i64: 64, 32>}, {pipeline_mode = #tpu.pipeline_mode<synchronous>, transform_indices = @transform_2, window_bounds = array<i64: 1, 32>}, {pipeline_mode = #tpu.pipeline_mode<synchronous>, transform_indices = @transform_3, window_bounds = array<i64: 1, 32>}, {transform_indices = @transform_4, window_bounds = array<i64: 2, 8>}]} {
    %c0 = arith.constant 0 : index
    %c0_0 = arith.constant 0 : index
    %0 = vector.load %arg1[%c0, %c0_0] : memref<16x64xf32, #tpu.memory_space<vmem>>, vector<16x64xf32>
    %c0_1 = arith.constant 0 : index
    %c0_2 = arith.constant 0 : index
    %1 = vector.load %arg2[%c0_1, %c0_2] : memref<64x32xf32, #tpu.memory_space<vmem>>, vector<64x32xf32>
    %cst = arith.constant dense<0.000000e+00> : vector<16x32xf32>
    %2 = tpu.matmul %0, %1, %cst {dimension_numbers = #tpu.dot_dimension_numbers<[1], [0], [0], [1], [0, 0, 1, 1], [], []>} : vector<16x64xf32>, vector<64x32xf32>, vector<16x32xf32> -> vector<16x32xf32>
    %c0_3 = arith.constant 0 : index
    %c0_4 = arith.constant 0 : index
    %3 = vector.load %arg3[%c0_3, %c0_4] : memref<1x32xf32, #tpu.memory_space<vmem>>, vector<1x32xf32>
    %4 = vector.broadcast %3 : vector<1x32xf32> to vector<16x32xf32>
    %5 = arith.addf %2, %4 : vector<16x32xf32>
    %6 = math.tanh %5 : vector<16x32xf32>
    %7 = vector.shape_cast %6 : vector<16x32xf32> to vector<2x8x32xf32>
    %c0_5 = arith.constant 0 : index
    %c0_6 = arith.constant 0 : index
    %8 = vector.load %arg4[%c0_5, %c0_6] : memref<1x32xf32, #tpu.memory_space<vmem>>, vector<1x32xf32>
    %9 = vector.shape_cast %8 : vector<1x32xf32> to vector<1x1x32xf32>
    %10 = vector.broadcast %9 : vector<1x1x32xf32> to vector<2x8x32xf32>
    %11 = arith.mulf %7, %10 : vector<2x8x32xf32>
    %cst_7 = arith.constant dense<0.000000e+00> : vector<2x8xf32>
    %12 = vector.multi_reduction <add>, %11, %cst_7 [2] : vector<2x8x32xf32> to vector<2x8xf32>
    %cst_8 = arith.constant dense<0xFF800000> : vector<2xf32>
    %13 = vector.multi_reduction <maximumf>, %12, %cst_8 [1] : vector<2x8xf32> to vector<2xf32>
    %14 = vector.shape_cast %13 : vector<2xf32> to vector<2x1xf32>
    %15 = vector.broadcast %14 : vector<2x1xf32> to vector<2x8xf32>
    %16 = arith.subf %12, %15 : vector<2x8xf32>
    %17 = math.exp %16 : vector<2x8xf32>
    %cst_9 = arith.constant dense<0.000000e+00> : vector<2xf32>
    %18 = vector.multi_reduction <add>, %17, %cst_9 [1] : vector<2x8xf32> to vector<2xf32>
    %19 = vector.shape_cast %18 : vector<2xf32> to vector<2x1xf32>
    %20 = tpu.reciprocal %19 {approx = true} : vector<2x1xf32> -> vector<2x1xf32>
    %21 = arith.mulf %19, %20 : vector<2x1xf32>
    %cst_10 = arith.constant 2.000000e+00 : f32
    %22 = vector.broadcast %cst_10 : f32 to vector<2x1xf32>
    %23 = arith.subf %22, %21 : vector<2x1xf32>
    %24 = arith.mulf %20, %23 : vector<2x1xf32>
    %25 = vector.broadcast %24 : vector<2x1xf32> to vector<2x8xf32>
    %26 = arith.mulf %17, %25 : vector<2x8xf32>
    %c0_11 = arith.constant 0 : index
    %c0_12 = arith.constant 0 : index
    %27 = vector.load %arg5[%c0_11, %c0_12] : memref<2x8xf32, #tpu.memory_space<vmem>>, vector<2x8xf32>
    tpu.vector_store %arg5[%c0_11, %c0_12], %26 {strides = array<i32>} : memref<2x8xf32, #tpu.memory_space<vmem>>, vector<2x8xf32>,
    return
  }
  func.func @transform_0(%arg0: i32) -> (i32, i32) {
    %c0_i32 = arith.constant 0 : i32
    %c0_i32_0 = arith.constant 0 : i32
    return %arg0, %c0_i32 : i32, i32
  }
  func.func @transform_1(%arg0: i32) -> (i32, i32) {
    %c0_i32 = arith.constant 0 : i32
    %c0_i32_0 = arith.constant 0 : i32
    %c0_i32_1 = arith.constant 0 : i32
    return %c0_i32, %c0_i32_0 : i32, i32
  }
  func.func @transform_2(%arg0: i32) -> (i32, i32) {
    %c0_i32 = arith.constant 0 : i32
    %c0_i32_0 = arith.constant 0 : i32
    %c0_i32_1 = arith.constant 0 : i32
    return %c0_i32, %c0_i32_0 : i32, i32
  }
  func.func @transform_3(%arg0: i32) -> (i32, i32) {
    %c0_i32 = arith.constant 0 : i32
    %c0_i32_0 = arith.constant 0 : i32
    %c0_i32_1 = arith.constant 0 : i32
    return %c0_i32, %c0_i32_0 : i32, i32
  }
  func.func @transform_4(%arg0: i32) -> (i32, i32) {
    %c0_i32 = arith.constant 0 : i32
    %c0_i32_0 = arith.constant 0 : i32
    return %arg0, %c0_i32 : i32, i32
  }
}

</mosaic_0001>

<bundles_post_ra>
// kernel: tpu_custom_call.1
= control target key start
LH: loop header
LB: loop body
LE: loop exit
PB: predicated region body
PF: predicated region fallthrough
CT: control target
= control target key end

     0   :  { %s281_s0 = inlined_call_operand.vmem [shape: f32[16,64], index: 0, kind: input, shape index: {}]   ;;  %s282_s1 = inlined_call_operand.vmem [shape: f32[64,32], index: 1, kind: input, shape index: {}]   ;;  %s283_s2 = inlined_call_operand.vmem [shape: f32[1,32], index: 2, kind: input, shape index: {}]   ;;  %s284_s3 = inlined_call_operand.vmem [shape: f32[1,32], index: 3, kind: input, shape index: {}]   ;;  %s285_s4 = inlined_call_operand.hbm [shape: f32[2,8], index: 4, kind: output, shape index: {}]  }
   0x1   :  { %v27_v0 = vld [vmem:[%s282_s1 + $0x38] sm:$0xff]  ;;  %v26_v1 = vld [vmem:[%s282_s1 + $0x30] sm:$0xff]  ;;  %v25_v2 = vld [vmem:[%s282_s1 + $0x28] sm:$0xff] }
   0x2   :  { %47 = vmatpush.msra.mxu0 %v27_v0  ;;  %158 = vmatpush.msra.mxu1 %v27_v0  ;;  %v24_v3 = vld [vmem:[%s282_s1 + $0x20] sm:$0xff] }
   0x4   :  { %48 = vmatpush.msra.mxu0 %v26_v1  ;;  %159 = vmatpush.msra.mxu1 %v26_v1 }
   0x5   :  { %9 = vsyncpa [#allocation3], 0  ;;  %v23_v4 = vld [vmem:[%s282_s1 + $0x18] sm:$0xff]  ;;  %v22_v5 = vld [vmem:[%s282_s1 + $0x10] sm:$0xff]  ;;  %vm32_vm0 = vcmask 523264   ;;  %vm70_vm1 = vcmask 261120   ;;  %v79_v23 = vlaneseq }
   0x6   :  { %49 = vmatpush.msra.mxu0 %v25_v2  ;;  %160 = vmatpush.msra.mxu1 %v25_v2  ;;  %v21_v6 = vld [vmem:[%s282_s1 + $0x8] sm:$0xff]  ;;  %v20_v7 = vld [vmem:[%s282_s1] sm:$0xff]  ;;  %vm83_vm2 = vcmask 1041409   ;;  %vm86_vm3 = vcmask 58368   ;;  %v209_v30 = vmov 0   ;;  %s147_s13 = sshll.u32 %s285_s4, 4  ;;  %s148_s13 = int_to_ptr.hbm [resolvable:$true] %s147_s13 }
   0x7   :  { %v18_v8 = vld [vmem:[%s281_s0] sm:$0xff]  ;;  %v19_v9 = vld [vmem:[%s281_s0 + $0x8] sm:$0xff]  ;;  %v80_v24 = vand.u32 127, %v79_v23  ;;  %169 = vset.pattern.permute.xlu2 %v209_v30  ;;  %168 = vset.pattern.permute.xlu1 %v209_v30  ;;  %s210_s0 = smov [#allocation2]  }
   0x8   :  { %50 = vmatpush.msra.mxu0 %v24_v3  ;;  %161 = vmatpush.msra.mxu1 %v24_v3  ;;  %v171_v10 = vld [vmem:[%s283_s2] ss:$0 sm:$0xff]  ;;  %s145_s2 = sshll.u32 %s210_s0, 4  ;;  %s146_s2 = int_to_ptr.vmem [resolvable:$true] %s145_s2 }
   0x9   :  { %v172_v15 = vld [vmem:[%s284_s3] ss:$0 sm:$0xff]  ;;  %170 = vset.pattern.permute.xlu0 %v209_v30 }
   0xa   :  { %51 = vmatpush.msra.mxu0 %v23_v4  ;;  %162 = vmatpush.msra.mxu1 %v23_v4 }
   0xc   :  { %52 = vmatpush.msra.mxu0 %v22_v5  ;;  %163 = vmatpush.msra.mxu1 %v22_v5 }
   0xe   :  { %53 = vmatpush.msra.mxu0 %v21_v6  ;;  %164 = vmatpush.msra.mxu1 %v21_v6 }
  0x10   :  { %54 = vmatpush.msra.mxu0 %v20_v7  ;;  %165 = vmatpush.msra.mxu1 %v20_v7 }
  0x11   :  { %156 = vmatmul.msk.f32.vlgmr.msra.gmra.mxu0 %vm32_vm0, %v18_v8  ;;  %157 = vmatmul.msk.f32.vlgmr.msra.gmra.mxu1 %vm32_vm0, %v19_v9 }
  0x8e   :  { %v56_v11 = vpop.f32.mrf.mxu0  ;;  %v59_v12 = vpop.f32.mrf.mxu1 }
  0x8f   :  { %v57_v13 = vadd.f32 %v171_v10, %v56_v11  ;;  %v60_v14 = vadd.f32 %v171_v10, %v59_v12 }
  0x91   :  { %173 = vtanh.f32 %v57_v13 }
  0x92   :  { %175 = vtanh.f32 %v60_v14 }
  0x97   :  { %v174_v16 = vpop.eup %173 }
  0x98   :  { %v68_v17 = vmul.f32 %v174_v16, %v172_v15  ;;  %v176_v18 = vpop.eup %175 }
  0x99   :  { %v69_v20 = vmul.f32 %v176_v18, %v172_v15 }
  0x9a   :  { %v71_v19 = vsel %vm70_vm1, %v68_v17, 0.0 }
  0x9b   :  { %72 = vadd.xlane.f32.xlu0 %v71_v19  ;;  %v74_v21 = vsel %vm70_vm1, %v69_v20, 0.0 }
  0xa3   :  { %75 = vadd.xlane.f32.xlu0 %v74_v21 }
 0x10e   :  { %v73_v22 = vpop.xlane.xlu0 %72 }
 0x10f   :  { %v81_v26 = vperm.slane %v73_v22, %v80_v24 }
 0x116   :  { %v76_v25 = vpop.xlane.xlu0 %75 }
 0x117   :  { %v82_v27 = vperm.slane %v76_v25, %v80_v24 }
 0x119   :  { %v84_v28 = vsel %vm83_vm2, %v82_v27, %v81_v26 }
 0x11a   :  { %v87_v29 = vsel %vm86_vm3, %v84_v28, -inf }
 0x11b   :  { %88 = vmax.xlane.f32.xlu1 %v87_v29 }
 0x18e   :  { %v89_v31 = vpop.xlane.xlu1 %88 }
 0x18f   :  { %v91_v32 = vperm.slane %v89_v31, 0  ;;  %v92_v33 = vperm.slane %v89_v31, 1 }
 0x191   :  { %v95_v34 = vsub.f32 %v73_v22, %v91_v32  ;;  %v96_v35 = vsub.f32 %v76_v25, %v92_v33 }
 0x193   :  { %v97_v36 = vmul.f32 1.442695, %v95_v34  ;;  %v99_v37 = vmul.f32 1.442695, %v96_v35 }
 0x195   :  { %177 = vpow2.f32 %v97_v36 }
 0x196   :  { %179 = vpow2.f32 %v99_v37 }
 0x19b   :  { %v178_v38 = vpop.eup %177 }
 0x19c   :  { %v180_v39 = vpop.eup %179  ;;  %104 = vperm.xlu1 %168, %v178_v38  }
 0x19d   :  { %107 = vperm.xlu2 %169, %v180_v39  }
 0x1f7   :  { %v108_v40 = vpop.permute.xlu2 %107 }
 0x1f8   :  { %v110_v42 = vperm.slane %v108_v40, %v80_v24 }
 0x20e   :  { %v105_v41 = vpop.permute.xlu1 %104 }
 0x20f   :  { %v109_v43 = vperm.slane %v105_v41, %v80_v24 }
 0x211   :  { %v111_v44 = vsel %vm83_vm2, %v110_v42, %v109_v43 }
 0x212   :  { %v113_v45 = vsel %vm86_vm3, %v111_v44, 0.0 }
 0x213   :  { %114 = vadd.xlane.f32.xlu2 %v113_v45 }
 0x286   :  { %v115_v46 = vpop.xlane.xlu2 %114 }
 0x287   :  { %181 = vrcp.f32 %v115_v46 }
 0x28d   :  { %v182_v47 = vpop.eup %181 }
 0x28e   :  { %v117_v48 = vmul.f32 %v182_v47, %v115_v46 }
 0x290   :  { %v118_v49 = vsub.f32 2.0, %v117_v48 }
 0x292   :  { %v119_v50 = vmul.f32 %v182_v47, %v118_v49 }
 0x294   :  { %v121_v51 = vperm.slane %v119_v50, 0  ;;  %v122_v52 = vperm.slane %v119_v50, 1 }
 0x296   :  { %v126_v53 = vmul.f32 %v180_v39, %v122_v52  ;;  %v125_v54 = vmul.f32 %v178_v38, %v121_v51 }
 0x298   :  { %133 = vperm.xlu1 %168, %v126_v53   ;;  %130 = vperm.xlu0 %170, %v125_v54  }
 0x30a   :  { %v134_v55 = vpop.permute.xlu1 %133  ;;  %v131_v56 = vpop.permute.xlu0 %130 }
 0x30b   :  { %v136_v57 = vperm.slane %v134_v55, %v80_v24  ;;  %v135_v58 = vperm.slane %v131_v56, %v80_v24 }
 0x30d   :  { %v137_v59 = vsel %vm83_vm2, %v136_v57, %v135_v58 }
 0x30e   :  { %139 = vst.msk [vmem:[#allocation2] sm:$0x3] %vm86_vm3, %v137_v59 }
 0x30f   :  { %150 = dma.vmem_to_hbm [thread:$0]  %s146_s2, 32, %s148_s13, [#allocation3]  }
 0x310   :  { %207 = dma.done.wait [#allocation3], 32  }
 0x311   :  { %208 = vsyncadd [#allocation3], 4294967264 }
 0x312   :  { %155 = vsyncpa [#allocation3], 1 }

</bundles_post_ra>
